<compile_context>
chip_gen: v5e
topology: v5e:2x2
jax: 0.10.0
libtpu: 0.0.40
codegen_flags: <defaults>
</compile_context>

<pallas_src>
import functools

import jax
import jax.numpy as jnp
from jax import lax
from jax.experimental import pallas as pl
from jax.experimental.pallas import tpu as pltpu


def _plan_tiles(S, C, itemsize, N, *, max_rows, vmem_budget_bytes, n_outer):
    """Pick (spatial rows, rows-per-tile, tiles-per-chunk, chunks, mask?, vmem limit)."""
    rows = -(-S // 128)                              # 128-lane spatial rows (ceil)
    # Per-row VMEM footprint: double-buffered logits + int32 target streams plus
    # the in-kernel f32 temporaries (e_c per class, running max, denom, inv, spare).
    per_row = 128 * (2 * C * itemsize + 2 * 4 + (C + 4) * 4)
    r_budget = max(8, min(max_rows, (vmem_budget_bytes // per_row) // 8 * 8))

    if rows <= r_budget:
        tile_rows, n_tiles = rows, 1                 # single tile (full-extent rows is legal)
    else:
        tile_rows = r_budget
        # Prefer an exact divisor within ~25% of the budget so no tail mask is needed;
        # never collapse to tiny tiles for awkward sizes (masking handles the tail).
        for cand in range(r_budget, max(8, (3 * r_budget) // 4) - 1, -8):
            if rows % cand == 0:
                tile_rows = cand
                break
        n_tiles = -(-rows // tile_rows)

    if n_outer is None:
        # Split one image's spatial reduction in two so both v7x TensorCores have
        # parallel work at tiny batch sizes (neutral on single-TC v5e/v6e).
        n_outer = 2 if (N <= 2 and n_tiles >= 2) else 1
    if n_outer < 1 or n_tiles % n_outer != 0:
        n_outer = 1
    n_s = n_tiles // n_outer

    need_mask = (n_tiles * tile_rows * 128) != S
    vmem_limit = int(min(48 << 20, max(2 * per_row * tile_rows + (2 << 20), 16 << 20)))
    return rows, tile_rows, n_s, n_outer, need_mask, vmem_limit


def _dice_kernel(S, need_mask, x_ref, t_ref, out_ref, inter_ref, sump_ref, sumt_ref):
    _, C, R, L = x_ref.shape                         # logits block (1, C, R, 128)
    s = pl.program_id(2)

    @pl.when(s == 0)
    def _():
        inter_ref[...] = jnp.zeros_like(inter_ref)
        sump_ref[...] = jnp.zeros_like(sump_ref)
        sumt_ref[...] = jnp.zeros_like(sumt_ref)

    # Per-class dense (R, 128) slabs (cast to f32 after the DMA); C is small, so
    # the class loops are unrolled straight-line code.
    x = [x_ref[0, c].astype(jnp.float32) for c in range(C)]
    m = x[0]
    for c in range(1, C):
        m = jnp.maximum(m, x[c])
    e = [jnp.exp(x[c] - m) for c in range(C)]        # softmax numerators, one exp/class
    denom = e[0]
    for c in range(1, C):
        denom = denom + e[c]
    # EUP approx reciprocal + one Newton step: divide leaves the VPU slot, result
    # stays f32-accurate (denom is in [1, C], so vrcp is well behaved).
    inv = pl.reciprocal(denom, approx=True)
    inv = inv * (2.0 - denom * inv)

    t = t_ref[0, 0]                                  # (R, 128) int32 class indices
    if need_mask:
        # Pixel-validity mask for the tail block (covers lane padding and the
        # out-of-bounds part of a non-divisible boundary block; any garbage/NaN
        # there is zeroed before the reductions).
        base = (pl.program_id(1) * pl.num_programs(2) + s) * (R * L)
        pix = (base
               + lax.broadcasted_iota(jnp.int32, (R, L), 0) * L
               + lax.broadcasted_iota(jnp.int32, (R, L), 1))
        valid = pix < S

    for c in range(C):
        p = e[c] * inv                               # softmax prob of class c, (R, 128)
        hit = t == c                                 # fused one-hot row
        if need_mask:
            hit = jnp.logical_and(hit, valid)
            pv = jnp.where(valid, p, 0.0)
        else:
            pv = p
        row = pl.ds(c, 1)
        inter_ref[row, :] += jnp.sum(jnp.where(hit, p, 0.0), axis=0, keepdims=True)
        sump_ref[row, :] += jnp.sum(pv, axis=0, keepdims=True)
        sumt_ref[row, :] += jnp.sum(hit.astype(jnp.float32), axis=0, keepdims=True)

    @pl.when(s == pl.num_programs(2) - 1)
    def _():
        # Lane-reduce the (C, 128) accumulators and emit per-(batch, chunk)
        # partials [intersect | sum_p | sum_t] as one (C, 3) block.
        res = jnp.concatenate(
            [jnp.sum(inter_ref[...], axis=1, keepdims=True),
             jnp.sum(sump_ref[...], axis=1, keepdims=True),
             jnp.sum(sumt_ref[...], axis=1, keepdims=True)], axis=1)
        out_ref[...] = res[None, None]


def dice_loss_pallas(logits_nchw, target_indices_nchw, *,
                     max_rows=8192, vmem_budget_bytes=20 << 20, n_outer=None):
    """1 - mean(dice) over (batch, class); matches DC.forward with index targets."""
    # TODO(synk): the PyTorch module also accepts an already-one-hot target with the
    # same shape as the logits; only the integer-index target branch is implemented.
    N, C, H, W = logits_nchw.shape
    S = H * W
    eps = 1e-19

    rows, R, n_s, n_out, need_mask, vmem_limit = _plan_tiles(
        S, C, logits_nchw.dtype.itemsize, N,
        max_rows=max_rows, vmem_budget_bytes=vmem_budget_bytes, n_outer=n_outer)

    x = logits_nchw.reshape(N, C, S)                 # keep native dtype (bf16 = half bytes)
    t = target_indices_nchw.reshape(N, 1, S).astype(jnp.int32)
    if S != rows * 128:
        # Rare: spatial size not a multiple of the 128-lane width; pad just to the
        # next lane boundary (the validity mask drops the padded pixels).
        pad = rows * 128 - S
        x = jnp.pad(x, ((0, 0), (0, 0), (0, pad)))
        t = jnp.pad(t, ((0, 0), (0, 0), (0, pad)))
    x = x.reshape(N, C, rows, 128)
    t = t.reshape(N, 1, rows, 128)

    parts = pl.pallas_call(
        functools.partial(_dice_kernel, S, need_mask),
        out_shape=jax.ShapeDtypeStruct((N, n_out, C, 3), jnp.float32),
        grid_spec=pltpu.PrefetchScalarGridSpec(
            num_scalar_prefetch=0,
            grid=(N, n_out, n_s),
            in_specs=[
                pl.BlockSpec((1, C, R, 128), lambda n, o, s: (n, 0, o * n_s + s, 0)),
                pl.BlockSpec((1, 1, R, 128), lambda n, o, s: (n, 0, o * n_s + s, 0)),
            ],
            out_specs=pl.BlockSpec((1, 1, C, 3), lambda n, o, s: (n, o, 0, 0)),
            scratch_shapes=[pltpu.VMEM((C, 128), jnp.float32)] * 3,
        ),
        compiler_params=pltpu.CompilerParams(
            dimension_semantics=("parallel", "parallel", "arbitrary"),
            vmem_limit_bytes=vmem_limit),
    )(x, t)

    # Combine the spatial chunks, then finish the dice ratio and the mean in the
    # wrapper (keeps both leading grid axes "parallel").
    sums = jnp.sum(parts, axis=1)                    # (N, C, 3)
    intersect, sum_p, sum_t = sums[..., 0], sums[..., 1], sums[..., 2]
    dice = 2.0 * intersect / (sum_p + sum_t + eps)
    return 1.0 - jnp.mean(dice)


def dice_loss_ref(logits_nchw, target_indices_nchw):
    """Pure-JAX reference mirroring the PyTorch DC module (index-target branch)."""
    N, C, H, W = logits_nchw.shape
    p = jax.nn.softmax(logits_nchw.astype(jnp.float32), axis=1)
    oh = jax.nn.one_hot(target_indices_nchw.reshape(N, H, W), C, axis=1,
                        dtype=jnp.float32)
    intersect = jnp.sum(p * oh, axis=(2, 3))
    dice = 2.0 * intersect / (jnp.sum(p, axis=(2, 3))
                              + jnp.sum(oh, axis=(2, 3)) + 1e-19)
    return 1.0 - jnp.mean(dice)


if __name__ == "__main__":
    key = jax.random.PRNGKey(0)
    k1, k2, k3, k4, k5, k6 = jax.random.split(key, 6)

    # DC(nb_classes=4): batch=2, classes=4, spatial 16x16 (single tile, no mask).
    N, C, H, W = 2, 4, 16, 16
    logits = jax.random.normal(k1, (N, C, H, W), dtype=jnp.float32)
    target = jax.random.randint(k2, (N, 1, H, W), 0, C, dtype=jnp.int32)
    loss = jax.block_until_ready(dice_loss_pallas(logits, target))
    ref = dice_loss_ref(logits, target)
    assert jnp.allclose(loss, ref, atol=1e-5, rtol=1e-5), (loss, ref)

    # Multi-tile spatial accumulation + 2-way "parallel" spatial split, exact
    # tiling (no mask), f32 logits.
    logits3 = jax.random.normal(k5, (2, 4, 64, 64), dtype=jnp.float32)
    target3 = jax.random.randint(k6, (2, 1, 64, 64), 0, 4, dtype=jnp.int32)
    loss3 = jax.block_until_ready(dice_loss_pallas(logits3, target3, max_rows=8))
    ref3 = dice_loss_ref(logits3, target3)
    assert jnp.allclose(loss3, ref3, atol=1e-5, rtol=1e-5), (loss3, ref3)

    # bf16 logits, spatial size not a multiple of 128 (lane pad + boundary block
    # + validity mask), multi-tile accumulation, spatial split.
    N2, C2, H2, W2 = 1, 6, 56, 56
    logits2 = jax.random.normal(k3, (N2, C2, H2, W2),
                                dtype=jnp.float32).astype(jnp.bfloat16)
    target2 = jax.random.randint(k4, (N2, 1, H2, W2), 0, C2, dtype=jnp.int32)
    loss2 = jax.block_until_ready(dice_loss_pallas(logits2, target2, max_rows=8))
    ref2 = dice_loss_ref(logits2, target2)
    assert jnp.allclose(loss2, ref2, atol=2e-5, rtol=1e-5), (loss2, ref2)

    print("KERNEL_OK")
</pallas_src>

<mosaic_0001>
module attributes {stable_mosaic.version = 11 : i64} {
  func.func @_dice_kernel(%arg0: i32, %arg1: i32, %arg2: i32, %arg3: memref<1x4x2x128xf32, #tpu.memory_space<vmem>>, %arg4: memref<1x1x2x128xi32, #tpu.memory_space<vmem>>, %arg5: memref<1x1x4x3xf32, #tpu.memory_space<vmem>>, %arg6: memref<4x128xf32, #tpu.memory_space<vmem>>, %arg7: memref<4x128xf32, #tpu.memory_space<vmem>>, %arg8: memref<4x128xf32, #tpu.memory_space<vmem>>) attributes {dimension_semantics = [#tpu.dimension_semantics<parallel>, #tpu.dimension_semantics<parallel>, #tpu.dimension_semantics<arbitrary>], iteration_bounds = array<i64: 2, 1, 1>, scalar_prefetch = 0 : i64, scratch_operands = 3 : i64, tpu.core_type = #tpu.core_type<tc>, window_params = [{transform_indices = @transform_0, window_bounds = array<i64: 1, 4, 2, 128>}, {transform_indices = @transform_1, window_bounds = array<i64: 1, 1, 2, 128>}, {transform_indices = @transform_2, window_bounds = array<i64: 1, 1, 4, 3>}]} {
    %c0_i32 = arith.constant 0 : i32
    %0 = arith.cmpi eq, %arg2, %c0_i32 : i32
    %1 = arith.extui %0 : i1 to i32
    %c0_i32_0 = arith.constant 0 : i32
    %2 = arith.cmpi ne, %1, %c0_i32_0 : i32
    scf.if %2 {
      %cst_84 = arith.constant 0.000000e+00 : f32
      %123 = vector.broadcast %cst_84 : f32 to vector<4x128xf32>
      %c0_85 = arith.constant 0 : index
      %c0_86 = arith.constant 0 : index
      %124 = vector.load %arg6[%c0_85, %c0_86] : memref<4x128xf32, #tpu.memory_space<vmem>>, vector<4x128xf32>
      tpu.vector_store %arg6[%c0_85, %c0_86], %123 {strides = array<i32>} : memref<4x128xf32, #tpu.memory_space<vmem>>, vector<4x128xf32>,
      %cst_87 = arith.constant 0.000000e+00 : f32
      %125 = vector.broadcast %cst_87 : f32 to vector<4x128xf32>
      %c0_88 = arith.constant 0 : index
      %c0_89 = arith.constant 0 : index
      %126 = vector.load %arg7[%c0_88, %c0_89] : memref<4x128xf32, #tpu.memory_space<vmem>>, vector<4x128xf32>
      tpu.vector_store %arg7[%c0_88, %c0_89], %125 {strides = array<i32>} : memref<4x128xf32, #tpu.memory_space<vmem>>, vector<4x128xf32>,
      %cst_90 = arith.constant 0.000000e+00 : f32
      %127 = vector.broadcast %cst_90 : f32 to vector<4x128xf32>
      %c0_91 = arith.constant 0 : index
      %c0_92 = arith.constant 0 : index
      %128 = vector.load %arg8[%c0_91, %c0_92] : memref<4x128xf32, #tpu.memory_space<vmem>>, vector<4x128xf32>
      tpu.vector_store %arg8[%c0_91, %c0_92], %127 {strides = array<i32>} : memref<4x128xf32, #tpu.memory_space<vmem>>, vector<4x128xf32>,
    } else {
    }
    %c0 = arith.constant 0 : index
    %c0_1 = arith.constant 0 : index
    %c0_2 = arith.constant 0 : index
    %c0_3 = arith.constant 0 : index
    %3 = vector.load %arg3[%c0, %c0_1, %c0_2, %c0_3] : memref<1x4x2x128xf32, #tpu.memory_space<vmem>>, vector<1x1x2x128xf32>
    %4 = vector.shape_cast %3 : vector<1x1x2x128xf32> to vector<2x128xf32>
    %c0_4 = arith.constant 0 : index
    %c1 = arith.constant 1 : index
    %c0_5 = arith.constant 0 : index
    %c0_6 = arith.constant 0 : index
    %5 = vector.load %arg3[%c0_4, %c1, %c0_5, %c0_6] : memref<1x4x2x128xf32, #tpu.memory_space<vmem>>, vector<1x1x2x128xf32>
    %6 = vector.shape_cast %5 : vector<1x1x2x128xf32> to vector<2x128xf32>
    %c0_7 = arith.constant 0 : index
    %c2 = arith.constant 2 : index
    %c0_8 = arith.constant 0 : index
    %c0_9 = arith.constant 0 : index
    %7 = vector.load %arg3[%c0_7, %c2, %c0_8, %c0_9] : memref<1x4x2x128xf32, #tpu.memory_space<vmem>>, vector<1x1x2x128xf32>
    %8 = vector.shape_cast %7 : vector<1x1x2x128xf32> to vector<2x128xf32>
    %c0_10 = arith.constant 0 : index
    %c3 = arith.constant 3 : index
    %c0_11 = arith.constant 0 : index
    %c0_12 = arith.constant 0 : index
    %9 = vector.load %arg3[%c0_10, %c3, %c0_11, %c0_12] : memref<1x4x2x128xf32, #tpu.memory_space<vmem>>, vector<1x1x2x128xf32>
    %10 = vector.shape_cast %9 : vector<1x1x2x128xf32> to vector<2x128xf32>
    %11 = arith.maximumf %4, %6 : vector<2x128xf32>
    %12 = arith.maximumf %11, %8 : vector<2x128xf32>
    %13 = arith.maximumf %12, %10 : vector<2x128xf32>
    %14 = arith.subf %4, %13 : vector<2x128xf32>
    %15 = math.exp %14 : vector<2x128xf32>
    %16 = arith.subf %6, %13 : vector<2x128xf32>
    %17 = math.exp %16 : vector<2x128xf32>
    %18 = arith.subf %8, %13 : vector<2x128xf32>
    %19 = math.exp %18 : vector<2x128xf32>
    %20 = arith.subf %10, %13 : vector<2x128xf32>
    %21 = math.exp %20 : vector<2x128xf32>
    %22 = arith.addf %15, %17 : vector<2x128xf32>
    %23 = arith.addf %22, %19 : vector<2x128xf32>
    %24 = arith.addf %23, %21 : vector<2x128xf32>
    %25 = tpu.reciprocal %24 {approx = true} : vector<2x128xf32> -> vector<2x128xf32>
    %26 = arith.mulf %24, %25 : vector<2x128xf32>
    %cst = arith.constant 2.000000e+00 : f32
    %27 = vector.broadcast %cst : f32 to vector<2x128xf32>
    %28 = arith.subf %27, %26 : vector<2x128xf32>
    %29 = arith.mulf %25, %28 : vector<2x128xf32>
    %c0_13 = arith.constant 0 : index
    %c0_14 = arith.constant 0 : index
    %c0_15 = arith.constant 0 : index
    %c0_16 = arith.constant 0 : index
    %30 = vector.load %arg4[%c0_13, %c0_14, %c0_15, %c0_16] : memref<1x1x2x128xi32, #tpu.memory_space<vmem>>, vector<1x1x2x128xi32>
    %31 = vector.shape_cast %30 : vector<1x1x2x128xi32> to vector<2x128xi32>
    %32 = arith.mulf %15, %29 : vector<2x128xf32>
    %c0_i32_17 = arith.constant 0 : i32
    %33 = vector.broadcast %c0_i32_17 : i32 to vector<2x128xi32>
    %34 = arith.cmpi eq, %31, %33 : vector<2x128xi32>
    %c0_18 = arith.constant 0 : index
    %c0_19 = arith.constant 0 : index
    %35 = vector.load %arg6[%c0_18, %c0_19] : memref<4x128xf32, #tpu.memory_space<vmem>>, vector<1x128xf32>
    %cst_20 = arith.constant 0.000000e+00 : f32
    %36 = vector.broadcast %cst_20 : f32 to vector<2x128xf32>
    %37 = arith.select %34, %32, %36 : vector<2x128xi1>, vector<2x128xf32>
    %cst_21 = arith.constant dense<0.000000e+00> : vector<128xf32>
    %38 = vector.multi_reduction <add>, %37, %cst_21 [0] : vector<2x128xf32> to vector<128xf32>
    %39 = vector.shape_cast %38 : vector<128xf32> to vector<1x128xf32>
    %40 = arith.addf %35, %39 : vector<1x128xf32>
    %c0_22 = arith.constant 0 : index
    %c0_23 = arith.constant 0 : index
    %41 = vector.load %arg6[%c0_22, %c0_23] : memref<4x128xf32, #tpu.memory_space<vmem>>, vector<1x128xf32>
    tpu.vector_store %arg6[%c0_22, %c0_23], %40 {strides = array<i32>} : memref<4x128xf32, #tpu.memory_space<vmem>>, vector<1x128xf32>,
    %c0_24 = arith.constant 0 : index
    %c0_25 = arith.constant 0 : index
    %42 = vector.load %arg7[%c0_24, %c0_25] : memref<4x128xf32, #tpu.memory_space<vmem>>, vector<1x128xf32>
    %cst_26 = arith.constant dense<0.000000e+00> : vector<128xf32>
    %43 = vector.multi_reduction <add>, %32, %cst_26 [0] : vector<2x128xf32> to vector<128xf32>
    %44 = vector.shape_cast %43 : vector<128xf32> to vector<1x128xf32>
    %45 = arith.addf %42, %44 : vector<1x128xf32>
    %c0_27 = arith.constant 0 : index
    %c0_28 = arith.constant 0 : index
    %46 = vector.load %arg7[%c0_27, %c0_28] : memref<4x128xf32, #tpu.memory_space<vmem>>, vector<1x128xf32>
    tpu.vector_store %arg7[%c0_27, %c0_28], %45 {strides = array<i32>} : memref<4x128xf32, #tpu.memory_space<vmem>>, vector<1x128xf32>,
    %c0_29 = arith.constant 0 : index
    %c0_30 = arith.constant 0 : index
    %47 = vector.load %arg8[%c0_29, %c0_30] : memref<4x128xf32, #tpu.memory_space<vmem>>, vector<1x128xf32>
    %48 = arith.extui %34 : vector<2x128xi1> to vector<2x128xi32>
    %49 = arith.sitofp %48 : vector<2x128xi32> to vector<2x128xf32>
    %cst_31 = arith.constant dense<0.000000e+00> : vector<128xf32>
    %50 = vector.multi_reduction <add>, %49, %cst_31 [0] : vector<2x128xf32> to vector<128xf32>
    %51 = vector.shape_cast %50 : vector<128xf32> to vector<1x128xf32>
    %52 = arith.addf %47, %51 : vector<1x128xf32>
    %c0_32 = arith.constant 0 : index
    %c0_33 = arith.constant 0 : index
    %53 = vector.load %arg8[%c0_32, %c0_33] : memref<4x128xf32, #tpu.memory_space<vmem>>, vector<1x128xf32>
    tpu.vector_store %arg8[%c0_32, %c0_33], %52 {strides = array<i32>} : memref<4x128xf32, #tpu.memory_space<vmem>>, vector<1x128xf32>,
    %54 = arith.mulf %17, %29 : vector<2x128xf32>
    %c1_i32 = arith.constant 1 : i32
    %55 = vector.broadcast %c1_i32 : i32 to vector<2x128xi32>
    %56 = arith.cmpi eq, %31, %55 : vector<2x128xi32>
    %c1_34 = arith.constant 1 : index
    %c0_35 = arith.constant 0 : index
    %57 = vector.load %arg6[%c1_34, %c0_35] : memref<4x128xf32, #tpu.memory_space<vmem>>, vector<1x128xf32>
    %cst_36 = arith.constant 0.000000e+00 : f32
    %58 = vector.broadcast %cst_36 : f32 to vector<2x128xf32>
    %59 = arith.select %56, %54, %58 : vector<2x128xi1>, vector<2x128xf32>
    %cst_37 = arith.constant dense<0.000000e+00> : vector<128xf32>
    %60 = vector.multi_reduction <add>, %59, %cst_37 [0] : vector<2x128xf32> to vector<128xf32>
    %61 = vector.shape_cast %60 : vector<128xf32> to vector<1x128xf32>
    %62 = arith.addf %57, %61 : vector<1x128xf32>
    %c1_38 = arith.constant 1 : index
    %c0_39 = arith.constant 0 : index
    %63 = vector.load %arg6[%c1_38, %c0_39] : memref<4x128xf32, #tpu.memory_space<vmem>>, vector<1x128xf32>
    tpu.vector_store %arg6[%c1_38, %c0_39], %62 {strides = array<i32>} : memref<4x128xf32, #tpu.memory_space<vmem>>, vector<1x128xf32>,
    %c1_40 = arith.constant 1 : index
    %c0_41 = arith.constant 0 : index
    %64 = vector.load %arg7[%c1_40, %c0_41] : memref<4x128xf32, #tpu.memory_space<vmem>>, vector<1x128xf32>
    %cst_42 = arith.constant dense<0.000000e+00> : vector<128xf32>
    %65 = vector.multi_reduction <add>, %54, %cst_42 [0] : vector<2x128xf32> to vector<128xf32>
    %66 = vector.shape_cast %65 : vector<128xf32> to vector<1x128xf32>
    %67 = arith.addf %64, %66 : vector<1x128xf32>
    %c1_43 = arith.constant 1 : index
    %c0_44 = arith.constant 0 : index
    %68 = vector.load %arg7[%c1_43, %c0_44] : memref<4x128xf32, #tpu.memory_space<vmem>>, vector<1x128xf32>
    tpu.vector_store %arg7[%c1_43, %c0_44], %67 {strides = array<i32>} : memref<4x128xf32, #tpu.memory_space<vmem>>, vector<1x128xf32>,
    %c1_45 = arith.constant 1 : index
    %c0_46 = arith.constant 0 : index
    %69 = vector.load %arg8[%c1_45, %c0_46] : memref<4x128xf32, #tpu.memory_space<vmem>>, vector<1x128xf32>
    %70 = arith.extui %56 : vector<2x128xi1> to vector<2x128xi32>
    %71 = arith.sitofp %70 : vector<2x128xi32> to vector<2x128xf32>
    %cst_47 = arith.constant dense<0.000000e+00> : vector<128xf32>
    %72 = vector.multi_reduction <add>, %71, %cst_47 [0] : vector<2x128xf32> to vector<128xf32>
    %73 = vector.shape_cast %72 : vector<128xf32> to vector<1x128xf32>
    %74 = arith.addf %69, %73 : vector<1x128xf32>
    %c1_48 = arith.constant 1 : index
    %c0_49 = arith.constant 0 : index
    %75 = vector.load %arg8[%c1_48, %c0_49] : memref<4x128xf32, #tpu.memory_space<vmem>>, vector<1x128xf32>
    tpu.vector_store %arg8[%c1_48, %c0_49], %74 {strides = array<i32>} : memref<4x128xf32, #tpu.memory_space<vmem>>, vector<1x128xf32>,
    %76 = arith.mulf %19, %29 : vector<2x128xf32>
    %c2_i32 = arith.constant 2 : i32
    %77 = vector.broadcast %c2_i32 : i32 to vector<2x128xi32>
    %78 = arith.cmpi eq, %31, %77 : vector<2x128xi32>
    %c2_50 = arith.constant 2 : index
    %c0_51 = arith.constant 0 : index
    %79 = vector.load %arg6[%c2_50, %c0_51] : memref<4x128xf32, #tpu.memory_space<vmem>>, vector<1x128xf32>
    %cst_52 = arith.constant 0.000000e+00 : f32
    %80 = vector.broadcast %cst_52 : f32 to vector<2x128xf32>
    %81 = arith.select %78, %76, %80 : vector<2x128xi1>, vector<2x128xf32>
    %cst_53 = arith.constant dense<0.000000e+00> : vector<128xf32>
    %82 = vector.multi_reduction <add>, %81, %cst_53 [0] : vector<2x128xf32> to vector<128xf32>
    %83 = vector.shape_cast %82 : vector<128xf32> to vector<1x128xf32>
    %84 = arith.addf %79, %83 : vector<1x128xf32>
    %c2_54 = arith.constant 2 : index
    %c0_55 = arith.constant 0 : index
    %85 = vector.load %arg6[%c2_54, %c0_55] : memref<4x128xf32, #tpu.memory_space<vmem>>, vector<1x128xf32>
    tpu.vector_store %arg6[%c2_54, %c0_55], %84 {strides = array<i32>} : memref<4x128xf32, #tpu.memory_space<vmem>>, vector<1x128xf32>,
    %c2_56 = arith.constant 2 : index
    %c0_57 = arith.constant 0 : index
    %86 = vector.load %arg7[%c2_56, %c0_57] : memref<4x128xf32, #tpu.memory_space<vmem>>, vector<1x128xf32>
    %cst_58 = arith.constant dense<0.000000e+00> : vector<128xf32>
    %87 = vector.multi_reduction <add>, %76, %cst_58 [0] : vector<2x128xf32> to vector<128xf32>
    %88 = vector.shape_cast %87 : vector<128xf32> to vector<1x128xf32>
    %89 = arith.addf %86, %88 : vector<1x128xf32>
    %c2_59 = arith.constant 2 : index
    %c0_60 = arith.constant 0 : index
    %90 = vector.load %arg7[%c2_59, %c0_60] : memref<4x128xf32, #tpu.memory_space<vmem>>, vector<1x128xf32>
    tpu.vector_store %arg7[%c2_59, %c0_60], %89 {strides = array<i32>} : memref<4x128xf32, #tpu.memory_space<vmem>>, vector<1x128xf32>,
    %c2_61 = arith.constant 2 : index
    %c0_62 = arith.constant 0 : index
    %91 = vector.load %arg8[%c2_61, %c0_62] : memref<4x128xf32, #tpu.memory_space<vmem>>, vector<1x128xf32>
    %92 = arith.extui %78 : vector<2x128xi1> to vector<2x128xi32>
    %93 = arith.sitofp %92 : vector<2x128xi32> to vector<2x128xf32>
    %cst_63 = arith.constant dense<0.000000e+00> : vector<128xf32>
    %94 = vector.multi_reduction <add>, %93, %cst_63 [0] : vector<2x128xf32> to vector<128xf32>
    %95 = vector.shape_cast %94 : vector<128xf32> to vector<1x128xf32>
    %96 = arith.addf %91, %95 : vector<1x128xf32>
    %c2_64 = arith.constant 2 : index
    %c0_65 = arith.constant 0 : index
    %97 = vector.load %arg8[%c2_64, %c0_65] : memref<4x128xf32, #tpu.memory_space<vmem>>, vector<1x128xf32>
    tpu.vector_store %arg8[%c2_64, %c0_65], %96 {strides = array<i32>} : memref<4x128xf32, #tpu.memory_space<vmem>>, vector<1x128xf32>,
    %98 = arith.mulf %21, %29 : vector<2x128xf32>
    %c3_i32 = arith.constant 3 : i32
    %99 = vector.broadcast %c3_i32 : i32 to vector<2x128xi32>
    %100 = arith.cmpi eq, %31, %99 : vector<2x128xi32>
    %c3_66 = arith.constant 3 : index
    %c0_67 = arith.constant 0 : index
    %101 = vector.load %arg6[%c3_66, %c0_67] : memref<4x128xf32, #tpu.memory_space<vmem>>, vector<1x128xf32>
    %cst_68 = arith.constant 0.000000e+00 : f32
    %102 = vector.broadcast %cst_68 : f32 to vector<2x128xf32>
    %103 = arith.select %100, %98, %102 : vector<2x128xi1>, vector<2x128xf32>
    %cst_69 = arith.constant dense<0.000000e+00> : vector<128xf32>
    %104 = vector.multi_reduction <add>, %103, %cst_69 [0] : vector<2x128xf32> to vector<128xf32>
    %105 = vector.shape_cast %104 : vector<128xf32> to vector<1x128xf32>
    %106 = arith.addf %101, %105 : vector<1x128xf32>
    %c3_70 = arith.constant 3 : index
    %c0_71 = arith.constant 0 : index
    %107 = vector.load %arg6[%c3_70, %c0_71] : memref<4x128xf32, #tpu.memory_space<vmem>>, vector<1x128xf32>
    tpu.vector_store %arg6[%c3_70, %c0_71], %106 {strides = array<i32>} : memref<4x128xf32, #tpu.memory_space<vmem>>, vector<1x128xf32>,
    %c3_72 = arith.constant 3 : index
    %c0_73 = arith.constant 0 : index
    %108 = vector.load %arg7[%c3_72, %c0_73] : memref<4x128xf32, #tpu.memory_space<vmem>>, vector<1x128xf32>
    %cst_74 = arith.constant dense<0.000000e+00> : vector<128xf32>
    %109 = vector.multi_reduction <add>, %98, %cst_74 [0] : vector<2x128xf32> to vector<128xf32>
    %110 = vector.shape_cast %109 : vector<128xf32> to vector<1x128xf32>
    %111 = arith.addf %108, %110 : vector<1x128xf32>
    %c3_75 = arith.constant 3 : index
    %c0_76 = arith.constant 0 : index
    %112 = vector.load %arg7[%c3_75, %c0_76] : memref<4x128xf32, #tpu.memory_space<vmem>>, vector<1x128xf32>
    tpu.vector_store %arg7[%c3_75, %c0_76], %111 {strides = array<i32>} : memref<4x128xf32, #tpu.memory_space<vmem>>, vector<1x128xf32>,
    %c3_77 = arith.constant 3 : index
    %c0_78 = arith.constant 0 : index
    %113 = vector.load %arg8[%c3_77, %c0_78] : memref<4x128xf32, #tpu.memory_space<vmem>>, vector<1x128xf32>
    %114 = arith.extui %100 : vector<2x128xi1> to vector<2x128xi32>
    %115 = arith.sitofp %114 : vector<2x128xi32> to vector<2x128xf32>
    %cst_79 = arith.constant dense<0.000000e+00> : vector<128xf32>
    %116 = vector.multi_reduction <add>, %115, %cst_79 [0] : vector<2x128xf32> to vector<128xf32>
    %117 = vector.shape_cast %116 : vector<128xf32> to vector<1x128xf32>
    %118 = arith.addf %113, %117 : vector<1x128xf32>
    %c3_80 = arith.constant 3 : index
    %c0_81 = arith.constant 0 : index
    %119 = vector.load %arg8[%c3_80, %c0_81] : memref<4x128xf32, #tpu.memory_space<vmem>>, vector<1x128xf32>
    tpu.vector_store %arg8[%c3_80, %c0_81], %118 {strides = array<i32>} : memref<4x128xf32, #tpu.memory_space<vmem>>, vector<1x128xf32>,
    %c0_i32_82 = arith.constant 0 : i32
    %120 = arith.cmpi eq, %arg2, %c0_i32_82 : i32
    %121 = arith.extui %120 : i1 to i32
    %c0_i32_83 = arith.constant 0 : i32
    %122 = arith.cmpi ne, %121, %c0_i32_83 : i32
    scf.if %122 {
      %c0_84 = arith.constant 0 : index
      %c0_85 = arith.constant 0 : index
      %123 = vector.load %arg6[%c0_84, %c0_85] : memref<4x128xf32, #tpu.memory_space<vmem>>, vector<4x128xf32>
      %cst_86 = arith.constant dense<0.000000e+00> : vector<4xf32>
      %124 = vector.multi_reduction <add>, %123, %cst_86 [1] : vector<4x128xf32> to vector<4xf32>
      %125 = vector.shape_cast %124 : vector<4xf32> to vector<4x1xf32>
      %c0_87 = arith.constant 0 : index
      %c0_88 = arith.constant 0 : index
      %126 = vector.load %arg7[%c0_87, %c0_88] : memref<4x128xf32, #tpu.memory_space<vmem>>, vector<4x128xf32>
      %cst_89 = arith.constant dense<0.000000e+00> : vector<4xf32>
      %127 = vector.multi_reduction <add>, %126, %cst_89 [1] : vector<4x128xf32> to vector<4xf32>
      %128 = vector.shape_cast %127 : vector<4xf32> to vector<4x1xf32>
      %c0_90 = arith.constant 0 : index
      %c0_91 = arith.constant 0 : index
      %129 = vector.load %arg8[%c0_90, %c0_91] : memref<4x128xf32, #tpu.memory_space<vmem>>, vector<4x128xf32>
      %cst_92 = arith.constant dense<0.000000e+00> : vector<4xf32>
      %130 = vector.multi_reduction <add>, %129, %cst_92 [1] : vector<4x128xf32> to vector<4xf32>
      %131 = vector.shape_cast %130 : vector<4xf32> to vector<4x1xf32>
      %132 = tpu.concatenate %125, %128, %131 in 1 : vector<4x1xf32>, vector<4x1xf32>, vector<4x1xf32> -> vector<4x3xf32>
      %133 = vector.shape_cast %132 : vector<4x3xf32> to vector<1x1x4x3xf32>
      %c0_93 = arith.constant 0 : index
      %c0_94 = arith.constant 0 : index
      %c0_95 = arith.constant 0 : index
      %c0_96 = arith.constant 0 : index
      %134 = vector.load %arg5[%c0_93, %c0_94, %c0_95, %c0_96] : memref<1x1x4x3xf32, #tpu.memory_space<vmem>>, vector<1x1x4x3xf32>
      tpu.vector_store %arg5[%c0_93, %c0_94, %c0_95, %c0_96], %133 {strides = array<i32>} : memref<1x1x4x3xf32, #tpu.memory_space<vmem>>, vector<1x1x4x3xf32>,
    } else {
    }
    return
  }
  func.func @transform_0(%arg0: i32, %arg1: i32, %arg2: i32) -> (i32, i32, i32, i32) {
    %c1_i32 = arith.constant 1 : i32
    %0 = arith.muli %arg1, %c1_i32 : i32
    %1 = arith.addi %0, %arg2 : i32
    %c0_i32 = arith.constant 0 : i32
    %c0_i32_0 = arith.constant 0 : i32
    %c0_i32_1 = arith.constant 0 : i32
    return %arg0, %c0_i32, %1, %c0_i32_0 : i32, i32, i32, i32
  }
  func.func @transform_1(%arg0: i32, %arg1: i32, %arg2: i32) -> (i32, i32, i32, i32) {
    %c1_i32 = arith.constant 1 : i32
    %0 = arith.muli %arg1, %c1_i32 : i32
    %1 = arith.addi %0, %arg2 : i32
    %c0_i32 = arith.constant 0 : i32
    %c0_i32_0 = arith.constant 0 : i32
    %c0_i32_1 = arith.constant 0 : i32
    return %arg0, %c0_i32, %1, %c0_i32_0 : i32, i32, i32, i32
  }
  func.func @transform_2(%arg0: i32, %arg1: i32, %arg2: i32) -> (i32, i32, i32, i32) {
    %c0_i32 = arith.constant 0 : i32
    %c0_i32_0 = arith.constant 0 : i32
    %c0_i32_1 = arith.constant 0 : i32
    return %arg0, %arg1, %c0_i32, %c0_i32_0 : i32, i32, i32, i32
  }
}

</mosaic_0001>

<bundles_post_ra>
// kernel: tpu_custom_call.1
= control target key start
LH: loop header
LB: loop body
LE: loop exit
PB: predicated region body
PF: predicated region fallthrough
CT: control target
= control target key end

     0   :  { %7 = vsyncpa [#allocation6], 0  ;;  %s929_s0 = inlined_call_operand.hbm [shape: f32[2,4,2,128], index: 0, kind: input, shape index: {}]   ;;  %s930_s1 = inlined_call_operand.hbm [shape: s32[2,1,2,128], index: 1, kind: input, shape index: {}]   ;;  %s931_s2 = inlined_call_operand.vmem [shape: f32[2,1,4,3], index: 2, kind: output, shape index: {}]  }
   0x1   :  { %9 = vsyncpa [#allocation6 + $0x1], 0 }
   0x2   :  { %10 = vsyncpa [#allocation8], 0 }
   0x3   :  { %12 = vsyncpa [#allocation8 + $0x1], 0  ;;  %s788_s9 = smov 0   ;;  %s790_s10 = smov 0  }
   0x4   :  { %s792_s11 = smov 0   ;;  %s794_s12 = smov 0  }
   0x5   :  { %s796_s13 = smov 0   ;;  %s798_s14 = smov 0  }
   0x6 LB: > { %s558_s15 = sadd.s32 4294967295, %s768_s14   ;;  %s37_s16 = sadd.s32 1, %s764_s13  ;;  %s768_s14 = sphi %s798_s14, %s18_s14   ;;  %s764_s13 = sphi %s796_s13, %s939_s13   ;;  %s760_s12 = sphi %s794_s12, %s938_s12   ;;  %s756_s11 = sphi %s792_s11, %s937_s11   ;;  %s752_s10 = sphi %s790_s10, %s936_s10   ;;  %s748_s9 = sphi %s788_s9, %s935_s9  }
   0x7   : > { %p39_p0 = scmp.ge.s32.totalorder %s37_s16, 2  ;;  %s48_s17 = sadd.s32 1, %s756_s11 }
   0x8   : > { %p55_p1 = scmp.ne.s32.totalorder %s756_s11, %s752_s10  ;;  %p56_p2 = scmp.eq.s32.totalorder %s768_s14, 0 }
   0x9   : > { %s941_s16 = smov (%p39_p0, %s37_s16), 0  ;;  %p61_p4 = scmp.ne.s32.totalorder %s752_s10, %s748_s9 }
   0xa   : > { %p824_p3 = por %p56_p2, %p55_p1  ;;  %s43_s19 = ssub.s32 %s764_s13, %s941_s16 }
   0xb   : > { %p62_p5 = scmp.eq.s32.totalorder %s558_s15, 0  ;;  %p46_p6 = scmp.eq.s32.totalorder %s43_s19, 0 }
   0xc   : > { %p592_p8 = scmp.lt.s32.totalorder %s768_s14, 2  ;;  %s143_s22 = sand.u32 1, %s756_s11  }
   0xd   : > { %p831_p7 = por %p62_p5, %p61_p4  ;;  %s580_s23 = sshll.u32 %s764_s13, 3 }
   0xe   : > { %s837_s21 = scalar_select %p46_p6, %s756_s11, %s48_s17  }
   0xf   : > { %s562_s24 = sshll.u32 %s143_s22, 3  ;;  %s154_s27 = scalar_lea.hbm %s929_s0, %s580_s23 }
  0x10   : > { %s155_s28 = sshll.u32 %s154_s27, 4  ;;  %s147_s29 = scalar_lea.vmem [#allocation5], %s562_s24  ;;  %s156_s28 = int_to_ptr.hbm [resolvable:$true] %s155_s28 }
  0x11   : > { %s157_s30 = sshll.u32 %s147_s29, 4  ;;  %p846_p9 = pnand %p592_p8, %p824_p3  ;;  %s158_s30 = int_to_ptr.vmem [resolvable:$true] %s157_s30 }
  0x12   : > { %p567_p10 = scmp.ge.s32.totalorder %s768_s14, 1  ;;  %p186_p11 = scmp.lt.s32.totalorder %s768_s14, 3 }
  0x13   : > { %s144_s4 = scalar_lea.sflag [#allocation6], %s143_s22  ;;  %s770_s5 = smov 32  }
  0x14   : > { %s771_s6 = smov 2   ;;  %p187_p12 = pnand %p567_p10, %p186_p11 }
  0x15   : > { %588 = dma.hbm_to_vmem [thread:$0]  (!%p846_p9), %s156_s28, 128, %s158_s30, %s144_s4, %s770_s5, %s770_s5, %s771_s6  }
  0x16   : > { %s565_s7 = sshll.u32 %s143_s22, 1  ;;  %s566_s8 = sshll.u32 %s764_s13, 1 }
  0x17   : > { %s177_s17 = scalar_lea.hbm %s930_s1, %s566_s8  ;;  %s171_s19 = scalar_lea.vmem [#allocation7], %s565_s7 }
  0x18   : > { %s179_s18 = sshll.u32 %s177_s17, 4  ;;  %s181_s23 = sshll.u32 %s171_s19, 4  ;;  %s180_s18 = int_to_ptr.hbm [resolvable:$true] %s179_s18  ;;  %s182_s23 = int_to_ptr.vmem [resolvable:$true] %s181_s23 }
  0x19   : > { %s168_s24 = scalar_lea.sflag [#allocation8], %s143_s22  ;;  %190 = sbr.rel (%p187_p12) target bundleno = 229 (0xe5), region = 28 }
  0x1a   : > { %591 = dma.hbm_to_vmem [thread:$0]  (!%p846_p9), %s180_s18, 32, %s182_s23, %s168_s24  }
  0x1b   : > { %s192_s25 = sand.u32 (!%p187_p12), 1, %s752_s10  }
  0x1c   : > { %s568_s26 = sshll.u32 (!%p187_p12), %s192_s25, 3  ;;  %s193_s27 = scalar_lea.sflag (!%p187_p12), [#allocation6], %s192_s25 }
  0x1d   : > { %s196_s28 = scalar_lea.vmem (!%p187_p12), [#allocation5], %s568_s26 }
  0x1e   : > { %739 = dma.done.wait (%p831_p7), %s193_s27, 128  }
  0x1f   : > { %741 = vsyncadd (%p831_p7), %s193_s27, 4294967168  ;;  %s569_s29 = sshll.u32 %s192_s25, 1  ;;  %s203_s30 = scalar_lea.sflag [#allocation8], %s192_s25 }
  0x20   : > { %s206_s4 = scalar_lea.vmem [#allocation7], %s569_s29 }
  0x21   : > { %743 = dma.done.wait (%p831_p7), %s203_s30, 32  }
  0x22   : > { %745 = vsyncadd (%p831_p7), %s203_s30, 4294967264  ;;  %v772_v0 = vmov 0.0   ;;  %v251_v1 = vld [vmem:[%s196_s28] sm:$0x3]  ;;  %v571_v2 = vld [vmem:[%s196_s28 + $0x2] sm:$0x3] }
  0x23   : > { %248 = vst [vmem:[#allocation2] sm:$0xf] %v772_v0  ;;  %v572_v3 = vld [vmem:[%s196_s28 + $0x4] sm:$0x3]  ;;  %v258_v4 = vmax.f32 %v251_v1, %v571_v2  ;;  %v573_v5 = vld [vmem:[%s196_s28 + $0x6] sm:$0x3] }
  0x24   : > { %249 = vst [vmem:[#allocation3] sm:$0xf] %v772_v0  ;;  %v869_v16 = vld [vmem:[%s206_s4] sm:$0x3]  ;;  %vm285_vm1 = vcmask 1041408   ;;  %vm426_vm5 = vcmask 1043456  }
  0x25   : > { %250 = vst [vmem:[#allocation4] sm:$0xf] %v772_v0  ;;  %v259_v6 = vmax.f32 %v258_v4, %v572_v3  ;;  %vm282_vm0 = vcmp.eq.s32.totalorder %v869_v16, 0  ;;  %vm318_vm2 = vcmp.eq.s32.totalorder %v869_v16, 1  ;;  %vm353_vm3 = vcmp.eq.s32.totalorder %v869_v16, 2  ;;  %p237_p13 = scmp.lt.s32.totalorder %s760_s12, 1 }
  0x26   : > { %vm388_vm4 = vcmp.eq.s32.totalorder %v869_v16, 3  ;;  %v574_v22 = vsel %vm282_vm0, 1.0, %v772_v0  ;;  %v575_v23 = vsel %vm318_vm2, 1.0, %v772_v0  ;;  %v576_v24 = vsel %vm353_vm3, 1.0, %v772_v0 }
  0x27   : > { %v260_v7 = vmax.f32 %v259_v6, %v573_v5  ;;  %v577_v25 = vsel %vm388_vm4, 1.0, %v772_v0  ;;  %v308_v27 = vsel %vm285_vm1, %v574_v22, 0.0  ;;  %v343_v28 = vsel %vm285_vm1, %v575_v23, 0.0  ;;  %s943_s12 = smov (!%p237_p13, %s760_s12), 1 }
  0x28   : > { %v378_v29 = vsel %vm285_vm1, %v576_v24, 0.0  ;;  %v309_v30 = vrot.slane %v308_v27, 4  ;;  %v344_v31 = vrot.slane %v343_v28, 4  ;;  %v413_v33 = vsel %vm285_vm1, %v577_v25, 0.0  ;;  %s570_s20 = sshll.u32 %s943_s12, 2 }
  0x29   : > { %v261_v8 = vsub.f32 %v251_v1, %v260_v7  ;;  %v264_v9 = vsub.f32 %v571_v2, %v260_v7  ;;  %v267_v10 = vsub.f32 %v572_v3, %v260_v7  ;;  %v270_v11 = vsub.f32 %v573_v5, %v260_v7  ;;  %s243_s5 = scalar_lea.vmem %s931_s2, %s570_s20 }
  0x2a   : > { %v379_v32 = vrot.slane %v378_v29, 4  ;;  %v414_v35 = vrot.slane %v413_v33, 4  ;;  %v310_v36 = vadd.f32 %v309_v30, %v308_v27  ;;  %v345_v37 = vadd.f32 %v344_v31, %v343_v28 }
  0x2b   : > { %v262_v12 = vmul.f32 1.442695, %v261_v8  ;;  %v265_v13 = vmul.f32 1.442695, %v264_v9  ;;  %v268_v14 = vmul.f32 1.442695, %v267_v10 }
  0x2c   : > { %v271_v15 = vmul.f32 1.442695, %v270_v11  ;;  %v380_v38 = vadd.f32 %v379_v32, %v378_v29  ;;  %v415_v39 = vadd.f32 %v414_v35, %v413_v33  ;;  %v311_v40 = vrot.slane %v310_v36, 2  ;;  %v305_v57 = vld [vmem:[#allocation4] sm:$0x1] }
  0x2d   : > { %644 = vpow2.f32 %v262_v12  ;;  %v346_v41 = vrot.slane %v345_v37, 2  ;;  %v340_v58 = vld [vmem:[#allocation4 + $0x1] sm:$0x1]  ;;  %v375_v63 = vld [vmem:[#allocation4 + $0x2] sm:$0x1]  ;;  %vm438_vm6 = vcmask 7168  }
  0x2e   : > { %646 = vpow2.f32 %v265_v13  ;;  %v381_v42 = vrot.slane %v380_v38, 2  ;;  %v416_v43 = vrot.slane %v415_v39, 2  ;;  %v312_v44 = vadd.f32 %v311_v40, %v310_v36  ;;  %v410_v0 = vld [vmem:[#allocation4 + $0x3] sm:$0x1] }
  0x2f   : > { %648 = vpow2.f32 %v268_v14  ;;  %v347_v45 = vadd.f32 %v346_v41, %v345_v37  ;;  %vm440_vm7 = vcmask 15360   ;;  %vm442_vm8 = vcmask 19456  }
  0x30   : > { %650 = vpow2.f32 %v271_v15  ;;  %v382_v46 = vadd.f32 %v381_v42, %v380_v38  ;;  %v417_v47 = vadd.f32 %v416_v43, %v415_v39  ;;  %v313_v48 = vrot.slane %v312_v44, 1 }
  0x31   : > { %v348_v49 = vrot.slane %v347_v45, 1 }
  0x32   : > { %v383_v50 = vrot.slane %v382_v46, 1  ;;  %v418_v52 = vrot.slane %v417_v47, 1  ;;  %v314_v54 = vadd.f32 %v313_v48, %v312_v44  ;;  %v283_v48 = vld [vmem:[#allocation2] sm:$0x1] }
  0x33   : > { %v645_v17 = vpop.eup %644  ;;  %v349_v55 = vadd.f32 %v348_v49, %v347_v45 }
  0x34   : > { %v647_v18 = vpop.eup %646  ;;  %v384_v56 = vadd.f32 %v383_v50, %v382_v46  ;;  %v419_v59 = vadd.f32 %v418_v52, %v417_v47  ;;  %v315_v61 = vadd.f32 %v314_v54, %v305_v57  ;;  %v354_v54 = vld [vmem:[#allocation2 + $0x2] sm:$0x1] }
  0x35   : > { %v649_v19 = vpop.eup %648  ;;  %v273_v20 = vadd.f32 %v647_v18, %v645_v17  ;;  %v350_v62 = vadd.f32 %v349_v55, %v340_v58  ;;  %v389_v55 = vld [vmem:[#allocation2 + $0x3] sm:$0x1] }
  0x36   : > { %v651_v21 = vpop.eup %650  ;;  %v385_v1 = vadd.f32 %v384_v56, %v375_v63  ;;  %v420_v2 = vadd.f32 %v419_v59, %v410_v0  ;;  %316 = vst [vmem:[#allocation4] sm:$0x1] %v315_v61 }
  0x37   : > { %v274_v26 = vadd.f32 %v649_v19, %v273_v20  ;;  %351 = vst [vmem:[#allocation4 + $0x1] sm:$0x1] %v350_v62 }
  0x38   : > { %386 = vst [vmem:[#allocation4 + $0x2] sm:$0x1] %v385_v1 }
  0x39   : > { %v275_v34 = vadd.f32 %v651_v21, %v274_v26  ;;  %421 = vst [vmem:[#allocation4 + $0x3] sm:$0x1] %v420_v2 }
  0x3b   : > { %652 = vrcp.f32 %v275_v34 }
  0x41   : > { %v653_v51 = vpop.eup %652 }
  0x42   : > { %v277_v53 = vmul.f32 %v653_v51, %v275_v34 }
  0x44   : > { %v278_v60 = vsub.f32 2.0, %v277_v53  ;;  %v319_v53 = vld [vmem:[#allocation2 + $0x1] sm:$0x1] }
  0x46   : > { %v279_v3 = vmul.f32 %v653_v51, %v278_v60 }
  0x48   : > { %v281_v4 = vmul.f32 %v645_v17, %v279_v3  ;;  %v317_v5 = vmul.f32 %v647_v18, %v279_v3  ;;  %v352_v6 = vmul.f32 %v649_v19, %v279_v3  ;;  %v387_v7 = vmul.f32 %v651_v21, %v279_v3 }
  0x4a   : > { %v284_v8 = vsel %vm282_vm0, %v281_v4, 0.0  ;;  %v320_v9 = vsel %vm318_vm2, %v317_v5, 0.0  ;;  %v355_v10 = vsel %vm353_vm3, %v352_v6, 0.0  ;;  %v390_v11 = vsel %vm388_vm4, %v387_v7, 0.0 }
  0x4b   : > { %v286_v12 = vsel %vm285_vm1, %v284_v8, 0.0  ;;  %v321_v13 = vsel %vm285_vm1, %v320_v9, 0.0  ;;  %v356_v14 = vsel %vm285_vm1, %v355_v10, 0.0  ;;  %v391_v15 = vsel %vm285_vm1, %v390_v11, 0.0  ;;  %v295_v9 = vld [vmem:[#allocation3] sm:$0x1] }
  0x4c   : > { %v287_v17 = vrot.slane %v286_v12, 4  ;;  %v322_v18 = vrot.slane %v321_v13, 4  ;;  %v357_v19 = vrot.slane %v356_v14, 4  ;;  %v392_v20 = vrot.slane %v391_v15, 4  ;;  %v330_v10 = vld [vmem:[#allocation3 + $0x1] sm:$0x1] }
  0x4d   : > { %v296_v21 = vsel %vm285_vm1, %v281_v4, 0.0  ;;  %v331_v22 = vsel %vm285_vm1, %v317_v5, 0.0  ;;  %v366_v23 = vsel %vm285_vm1, %v352_v6, 0.0  ;;  %v401_v16 = vsel %vm285_vm1, %v387_v7, 0.0  ;;  %v434_v4 = vld [vmem:[#allocation4] sm:$0xf] }
  0x4e   : > { %v288_v24 = vadd.f32 %v287_v17, %v286_v12  ;;  %v323_v25 = vadd.f32 %v322_v18, %v321_v13  ;;  %v358_v26 = vadd.f32 %v357_v19, %v356_v14  ;;  %v393_v27 = vadd.f32 %v392_v20, %v391_v15  ;;  %v365_v13 = vld [vmem:[#allocation3 + $0x2] sm:$0x1]  ;;  %v400_v17 = vld [vmem:[#allocation3 + $0x3] sm:$0x1] }
  0x4f   : > { %v297_v28 = vrot.slane %v296_v21, 4  ;;  %v332_v29 = vrot.slane %v331_v22, 4  ;;  %v367_v30 = vrot.slane %v366_v23, 4  ;;  %v402_v31 = vrot.slane %v401_v16, 4 }
  0x50   : > { %v289_v32 = vrot.slane %v288_v24, 2  ;;  %v324_v33 = vrot.slane %v323_v25, 2  ;;  %v359_v34 = vrot.slane %v358_v26, 2  ;;  %v394_v35 = vrot.slane %v393_v27, 2 }
  0x51   : > { %v298_v36 = vadd.f32 %v297_v28, %v296_v21  ;;  %v333_v37 = vadd.f32 %v332_v29, %v331_v22  ;;  %v368_v38 = vadd.f32 %v367_v30, %v366_v23  ;;  %v403_v39 = vadd.f32 %v402_v31, %v401_v16 }
  0x52   : > { %v290_v40 = vadd.f32 %v289_v32, %v288_v24  ;;  %v325_v41 = vadd.f32 %v324_v33, %v323_v25  ;;  %v360_v42 = vadd.f32 %v359_v34, %v358_v26  ;;  %v395_v43 = vadd.f32 %v394_v35, %v393_v27 }
  0x53   : > { %v299_v44 = vrot.slane %v298_v36, 2  ;;  %v334_v45 = vrot.slane %v333_v37, 2  ;;  %v369_v46 = vrot.slane %v368_v38, 2  ;;  %v404_v47 = vrot.slane %v403_v39, 2 }
  0x54   : > { %v291_v49 = vrot.slane %v290_v40, 1  ;;  %v326_v50 = vrot.slane %v325_v41, 1  ;;  %v361_v51 = vrot.slane %v360_v42, 1  ;;  %v396_v52 = vrot.slane %v395_v43, 1 }
  0x55   : > { %v300_v56 = vadd.f32 %v299_v44, %v298_v36  ;;  %v335_v57 = vadd.f32 %v334_v45, %v333_v37  ;;  %v370_v58 = vadd.f32 %v369_v46, %v368_v38  ;;  %v405_v59 = vadd.f32 %v404_v47, %v403_v39 }
  0x56   : > { %v292_v60 = vadd.f32 %v291_v49, %v290_v40  ;;  %v327_v61 = vadd.f32 %v326_v50, %v325_v41  ;;  %v362_v62 = vadd.f32 %v361_v51, %v360_v42  ;;  %v397_v63 = vadd.f32 %v396_v52, %v395_v43 }
  0x57   : > { %v301_v0 = vrot.slane %v300_v56, 1  ;;  %v336_v1 = vrot.slane %v335_v57, 1  ;;  %v371_v2 = vrot.slane %v370_v58, 1  ;;  %v406_v3 = vrot.slane %v405_v59, 1 }
  0x58   : > { %v293_v5 = vadd.f32 %v292_v60, %v283_v48  ;;  %v328_v6 = vadd.f32 %v327_v61, %v319_v53  ;;  %v363_v7 = vadd.f32 %v362_v62, %v354_v54  ;;  %v398_v8 = vadd.f32 %v397_v63, %v389_v55 }
  0x59   : > { %v302_v11 = vadd.f32 %v301_v0, %v300_v56  ;;  %v337_v12 = vadd.f32 %v336_v1, %v335_v57  ;;  %v372_v14 = vadd.f32 %v371_v2, %v370_v58  ;;  %v407_v15 = vadd.f32 %v406_v3, %v405_v59 }
  0x5a   : > { %294 = vst [vmem:[#allocation2] sm:$0x1] %v293_v5  ;;  %v435_v18 = vsel %vm426_vm5, %v434_v4, 0.0 }
  0x5b   : > { %329 = vst [vmem:[#allocation2 + $0x1] sm:$0x1] %v328_v6  ;;  %v303_v19 = vadd.f32 %v302_v11, %v295_v9  ;;  %v338_v20 = vadd.f32 %v337_v12, %v330_v10  ;;  %v373_v21 = vadd.f32 %v372_v14, %v365_v13  ;;  %436 = vadd.xlane.f32.xlu1 %v435_v18 }
  0x5c   : > { %364 = vst [vmem:[#allocation2 + $0x2] sm:$0x1] %v363_v7  ;;  %v408_v22 = vadd.f32 %v407_v15, %v400_v17 }
  0x5d   : > { %399 = vst [vmem:[#allocation2 + $0x3] sm:$0x1] %v398_v8 }
  0x5e   : > { %304 = vst [vmem:[#allocation3] sm:$0x1] %v303_v19 }
  0x5f   : > { %339 = vst [vmem:[#allocation3 + $0x1] sm:$0x1] %v338_v20 }
  0x60   : > { %374 = vst [vmem:[#allocation3 + $0x2] sm:$0x1] %v373_v21 }
  0x61   : > { %409 = vst [vmem:[#allocation3 + $0x3] sm:$0x1] %v408_v22 }
  0x64   : > { %v425_v23 = vld [vmem:[#allocation2] sm:$0xf] }
  0x65   : > { %v427_v16 = vsel %vm426_vm5, %v425_v23, 0.0 }
  0x66   : > { %428 = vadd.xlane.f32.xlu0 %v427_v16 }
  0x68   : > { %v430_v24 = vld [vmem:[#allocation3] sm:$0xf] }
  0x69   : > { %v431_v25 = vsel %vm426_vm5, %v430_v24, 0.0 }
  0x6e   : > { %432 = vadd.xlane.f32.xlu0 %v431_v25 }
  0xce   : > { %v437_v27 = vpop.xlane.xlu1 %436 }
  0xd9   : > { %v429_v26 = vpop.xlane.xlu0 %428 }
  0xe1   : > { %v433_v28 = vpop.xlane.xlu0 %432 }
  0xe2   : > { %v439_v29 = vsel %vm438_vm6, %v429_v26, %v433_v28 }
  0xe3   : > { %v441_v30 = vsel %vm440_vm7, %v439_v29, %v437_v27 }
  0xe4   : > { %443 = vst.msk [vmem:[%s243_s5] sm:$0xf] %vm442_vm8, %v441_v30 }
  0xe5 PF: > { %s18_s14 = sadd.s32 1, %s768_s14   ;;  %s935_s9 = smov %s752_s10 }
  0xe6   : > { %p15_p0 = scmp.ge.s32.totalorder %s18_s14, 4   ;;  %s936_s10 = smov %s756_s11 }
  0xe7   : > { %s937_s11 = smov %s837_s21  ;;  %s938_s12 = smov %s764_s13 }
  0xe8   : > { %s939_s13 = smov %s941_s16  ;;  %17 = sbr.rel (!%p15_p0) target bundleno = 6 (0x6), region = 92 }
  0xed   :  { %469 = vsyncpa [#allocation6], 1 }
  0xee   :  { %471 = vsyncpa [#allocation6 + $0x1], 1 }
  0xef   :  { %472 = vsyncpa [#allocation8], 1 }
  0xf0   :  { %474 = vsyncpa [#allocation8 + $0x1], 1 }

</bundles_post_ra>
